<compile_context>
chip_gen: v7x
topology: tpu7x:2x2x1
jax: 0.10.0
libtpu: 0.0.40
codegen_flags: <defaults>
</compile_context>

<pallas_src>
import functools
import math

import jax
import jax.numpy as jnp
from jax.experimental import pallas as pl
from jax.experimental.pallas import tpu as pltpu

_LANE = 128
_SUBLANE = 8


def _vmem_capacity_bytes():
    """Per-core VMEM capacity; conservative 64 MiB (v7x) fallback."""
    cap = 64 * 1024 * 1024
    try:
        cap = int(pltpu.get_tpu_info().vmem_capacity_bytes)
    except Exception:
        pass
    return max(32 * 1024 * 1024, min(cap, 128 * 1024 * 1024))


def _ln_kernel_dense(x_ref, w_ref, b_ref, o_ref, *, eps):
    """One logical row per block row; hidden lives on the lane axis."""
    x = x_ref[...].astype(jnp.float32)                      # (tr, hidden)
    mean = jnp.mean(x, axis=-1, keepdims=True)
    ex2 = jnp.mean(x * x, axis=-1, keepdims=True)           # single pass
    var = jnp.maximum(ex2 - mean * mean, 0.0)
    inv = jax.lax.rsqrt(var + eps)
    y = (x - mean) * inv
    o_ref[...] = (w_ref[...] * y + b_ref[...]).astype(o_ref.dtype)


def _ln_kernel_packed(x_ref, w_ref, b_ref, s_ref, st_ref, o_ref, *, eps, inv_hidden):
    """k logical rows packed along the 128-lane axis (small hidden).

    Segmented reductions are done with small matmuls against a 0/1 segment
    selector (MXU slot is free in this memory-bound kernel), keeping all
    loads/stores lane-dense."""
    x = x_ref[...].astype(jnp.float32)                      # (tr, k*hidden)
    seg_sel = s_ref[...]                                    # (k*hidden, k)
    seg_bcast = st_ref[...]                                 # (k, k*hidden)
    seg_mean = jnp.dot(x, seg_sel, preferred_element_type=jnp.float32) * inv_hidden
    seg_ex2 = jnp.dot(x * x, seg_sel, preferred_element_type=jnp.float32) * inv_hidden
    mean = jnp.dot(seg_mean, seg_bcast, preferred_element_type=jnp.float32)
    ex2 = jnp.dot(seg_ex2, seg_bcast, preferred_element_type=jnp.float32)
    var = jnp.maximum(ex2 - mean * mean, 0.0)
    inv = jax.lax.rsqrt(var + eps)
    y = (x - mean) * inv
    o_ref[...] = (w_ref[...] * y + b_ref[...]).astype(o_ref.dtype)


def layernorm(x, weight, bias, eps=1e-12):
    """TF-style LayerNorm over the last axis. x: (..., hidden)."""
    orig_shape = x.shape
    hidden = int(orig_shape[-1])
    rows = int(math.prod(orig_shape[:-1]))
    x2 = x.reshape(rows, hidden)

    # Lane packing factor: pack k rows per 128-lane block when hidden is small.
    if hidden < _LANE and _LANE % hidden == 0:
        k = _LANE // hidden
    else:
        k = 1
    width = k * hidden
    itemsize = x.dtype.itemsize

    # ---- tile sizing: biggest row tile whose double-buffered in+out fits budget
    vmem_cap = _vmem_capacity_bytes()
    tile_budget = (vmem_cap * 3) // 8            # ~24 MiB on v7x, ~48 MiB v5e/v6e
    tr = tile_budget // (4 * width * itemsize)   # 2 buffers x (in tile + out tile)
    tr = min(1024, max(_SUBLANE, (tr // _SUBLANE) * _SUBLANE))

    n_need = -(-rows // k)                       # packed rows needed (cdiv)
    if tr >= n_need:
        tr = n_need                              # one block == full (padded) array
    n_prows = -(-n_need // tr) * tr              # pad packed rows to multiple of tr
    rows_p = n_prows * k

    if rows_p != rows:                           # ragged rows: zero-pad, slice later
        x2 = jnp.pad(x2, ((0, rows_p - rows), (0, 0)))
    xp = x2.reshape(n_prows, width)

    # weight / bias: cast to f32 + replicate across packed segments ONCE (hoisted).
    w_row = jnp.tile(weight.astype(jnp.float32).reshape(-1), k).reshape(1, width)
    b_row = jnp.tile(bias.astype(jnp.float32).reshape(-1), k).reshape(1, width)

    grid = (n_prows // tr,)
    x_spec = pl.BlockSpec((tr, width), lambda i: (i, 0))
    wb_spec = pl.BlockSpec((1, width), lambda i: (0, 0))
    out_spec = pl.BlockSpec((tr, width), lambda i: (i, 0))

    cost = pl.CostEstimate(
        flops=8 * rows * hidden,
        transcendentals=rows,
        bytes_accessed=2 * rows * hidden * itemsize,
    )
    cparams = pltpu.CompilerParams(
        dimension_semantics=("parallel",),
        vmem_limit_bytes=int(min((vmem_cap * 3) // 4, 96 * 1024 * 1024)),
    )

    if k == 1:
        kern = functools.partial(_ln_kernel_dense, eps=float(eps))
        out = pl.pallas_call(
            kern,
            out_shape=jax.ShapeDtypeStruct((n_prows, width), x.dtype),
            grid_spec=pltpu.PrefetchScalarGridSpec(
                num_scalar_prefetch=0,
                grid=grid,
                in_specs=[x_spec, wb_spec, wb_spec],
                out_specs=out_spec,
            ),
            compiler_params=cparams,
            cost_estimate=cost,
        )(xp, w_row, b_row)
    else:
        # 0/1 segment selector (width, k) and its transpose (k, width); both tiny
        # and VMEM-resident (constant block index -> no re-DMA per grid step).
        seg_ids = jnp.arange(width) // hidden
        seg_sel = (seg_ids[:, None] == jnp.arange(k)[None, :]).astype(jnp.float32)
        seg_bcast = seg_sel.T
        kern = functools.partial(
            _ln_kernel_packed, eps=float(eps), inv_hidden=float(1.0 / hidden)
        )
        s_spec = pl.BlockSpec((width, k), lambda i: (0, 0))
        st_spec = pl.BlockSpec((k, width), lambda i: (0, 0))
        out = pl.pallas_call(
            kern,
            out_shape=jax.ShapeDtypeStruct((n_prows, width), x.dtype),
            grid_spec=pltpu.PrefetchScalarGridSpec(
                num_scalar_prefetch=0,
                grid=grid,
                in_specs=[x_spec, wb_spec, wb_spec, s_spec, st_spec],
                out_specs=out_spec,
            ),
            compiler_params=cparams,
            cost_estimate=cost,
        )(xp, w_row, b_row, seg_sel, seg_bcast)

    out = out.reshape(rows_p, hidden)[:rows]
    return out.reshape(orig_shape)


def layernorm_ref(x, weight, bias, eps=1e-12):
    u = jnp.mean(x, axis=-1, keepdims=True)
    s = jnp.mean((x - u) ** 2, axis=-1, keepdims=True)
    xn = (x - u) / jnp.sqrt(s + eps)
    return weight * xn + bias


if __name__ == "__main__":
    key = jax.random.PRNGKey(0)

    # Primary shape implied by the module's test usage: (batch, seq, hidden).
    batch, seq, hidden = 2, 8, 32
    x = jax.random.normal(key, (batch, seq, hidden), dtype=jnp.float32)
    weight = jnp.ones((hidden,), dtype=jnp.float32)   # nn.Parameter(ones(hidden))
    bias = jnp.zeros((hidden,), dtype=jnp.float32)    # nn.Parameter(zeros(hidden))

    out = layernorm(x, weight, bias, eps=1e-12)       # packed (lane-dense) path
    jax.block_until_ready(out)
    ref = layernorm_ref(x, weight, bias, eps=1e-12)
    assert out.shape == x.shape
    assert jnp.allclose(out, ref, atol=1e-5, rtol=1e-5), "mismatch vs reference (packed)"

    # Secondary checks: lane-dense (k=1) path and ragged-row padding path.
    k2 = jax.random.PRNGKey(1)
    x_d = jax.random.normal(k2, (4, 256), dtype=jnp.float32)
    w_d = jnp.ones((256,), dtype=jnp.float32)
    b_d = jnp.zeros((256,), dtype=jnp.float32)
    out_d = layernorm(x_d, w_d, b_d, eps=1e-12)
    jax.block_until_ready(out_d)
    assert jnp.allclose(out_d, layernorm_ref(x_d, w_d, b_d, 1e-12),
                        atol=1e-5, rtol=1e-5), "mismatch vs reference (dense)"

    x_r = jax.random.normal(jax.random.PRNGKey(2), (3, 5, 32), dtype=jnp.float32)
    out_r = layernorm(x_r, weight, bias, eps=1e-12)
    jax.block_until_ready(out_r)
    assert jnp.allclose(out_r, layernorm_ref(x_r, weight, bias, 1e-12),
                        atol=1e-5, rtol=1e-5), "mismatch vs reference (ragged)"

    print("KERNEL_OK")
</pallas_src>

<mosaic_0001>
module attributes {stable_mosaic.version = 11 : i64} {
  func.func @_ln_kernel_packed(%arg0: i32, %arg1: memref<4x128xf32, #tpu.memory_space<vmem>>, %arg2: memref<1x128xf32, #tpu.memory_space<vmem>>, %arg3: memref<1x128xf32, #tpu.memory_space<vmem>>, %arg4: memref<128x4xf32, #tpu.memory_space<vmem>>, %arg5: memref<4x128xf32, #tpu.memory_space<vmem>>, %arg6: memref<4x128xf32, #tpu.memory_space<vmem>>) attributes {dimension_semantics = [#tpu.dimension_semantics<parallel>], iteration_bounds = array<i64: 1>, scalar_prefetch = 0 : i64, scratch_operands = 0 : i64, tpu.core_type = #tpu.core_type<tc>, window_params = [{transform_indices = @transform_0, window_bounds = array<i64: 4, 128>}, {pipeline_mode = #tpu.pipeline_mode<synchronous>, transform_indices = @transform_1, window_bounds = array<i64: 1, 128>}, {pipeline_mode = #tpu.pipeline_mode<synchronous>, transform_indices = @transform_2, window_bounds = array<i64: 1, 128>}, {pipeline_mode = #tpu.pipeline_mode<synchronous>, transform_indices = @transform_3, window_bounds = array<i64: 128, 4>}, {pipeline_mode = #tpu.pipeline_mode<synchronous>, transform_indices = @transform_4, window_bounds = array<i64: 4, 128>}, {transform_indices = @transform_5, window_bounds = array<i64: 4, 128>}]} {
    %c0 = arith.constant 0 : index
    %c0_0 = arith.constant 0 : index
    %0 = vector.load %arg1[%c0, %c0_0] : memref<4x128xf32, #tpu.memory_space<vmem>>, vector<4x128xf32>
    %c0_1 = arith.constant 0 : index
    %c0_2 = arith.constant 0 : index
    %1 = vector.load %arg4[%c0_1, %c0_2] : memref<128x4xf32, #tpu.memory_space<vmem>>, vector<128x4xf32>
    %c0_3 = arith.constant 0 : index
    %c0_4 = arith.constant 0 : index
    %2 = vector.load %arg5[%c0_3, %c0_4] : memref<4x128xf32, #tpu.memory_space<vmem>>, vector<4x128xf32>
    %cst = arith.constant dense<0.000000e+00> : vector<4x4xf32>
    %3 = tpu.matmul %0, %1, %cst {dimension_numbers = #tpu.dot_dimension_numbers<[1], [0], [0], [1], [0, 0, 1, 1], [], []>} : vector<4x128xf32>, vector<128x4xf32>, vector<4x4xf32> -> vector<4x4xf32>
    %cst_5 = arith.constant 3.125000e-02 : f32
    %4 = vector.broadcast %cst_5 : f32 to vector<4x4xf32>
    %5 = arith.mulf %3, %4 : vector<4x4xf32>
    %6 = arith.mulf %0, %0 : vector<4x128xf32>
    %cst_6 = arith.constant dense<0.000000e+00> : vector<4x4xf32>
    %7 = tpu.matmul %6, %1, %cst_6 {dimension_numbers = #tpu.dot_dimension_numbers<[1], [0], [0], [1], [0, 0, 1, 1], [], []>} : vector<4x128xf32>, vector<128x4xf32>, vector<4x4xf32> -> vector<4x4xf32>
    %cst_7 = arith.constant 3.125000e-02 : f32
    %8 = vector.broadcast %cst_7 : f32 to vector<4x4xf32>
    %9 = arith.mulf %7, %8 : vector<4x4xf32>
    %cst_8 = arith.constant dense<0.000000e+00> : vector<4x128xf32>
    %10 = tpu.matmul %5, %2, %cst_8 {dimension_numbers = #tpu.dot_dimension_numbers<[1], [0], [0], [1], [0, 0, 1, 1], [], []>} : vector<4x4xf32>, vector<4x128xf32>, vector<4x128xf32> -> vector<4x128xf32>
    %cst_9 = arith.constant dense<0.000000e+00> : vector<4x128xf32>
    %11 = tpu.matmul %9, %2, %cst_9 {dimension_numbers = #tpu.dot_dimension_numbers<[1], [0], [0], [1], [0, 0, 1, 1], [], []>} : vector<4x4xf32>, vector<4x128xf32>, vector<4x128xf32> -> vector<4x128xf32>
    %12 = arith.mulf %10, %10 : vector<4x128xf32>
    %13 = arith.subf %11, %12 : vector<4x128xf32>
    %cst_10 = arith.constant 0.000000e+00 : f32
    %14 = vector.broadcast %cst_10 : f32 to vector<4x128xf32>
    %15 = arith.maximumf %13, %14 : vector<4x128xf32>
    %cst_11 = arith.constant 9.99999996E-13 : f32
    %16 = vector.broadcast %cst_11 : f32 to vector<4x128xf32>
    %17 = arith.addf %15, %16 : vector<4x128xf32>
    %18 = math.rsqrt %17 : vector<4x128xf32>
    %19 = arith.subf %0, %10 : vector<4x128xf32>
    %20 = arith.mulf %19, %18 : vector<4x128xf32>
    %c0_12 = arith.constant 0 : index
    %c0_13 = arith.constant 0 : index
    %21 = vector.load %arg2[%c0_12, %c0_13] : memref<1x128xf32, #tpu.memory_space<vmem>>, vector<1x128xf32>
    %22 = vector.broadcast %21 : vector<1x128xf32> to vector<4x128xf32>
    %23 = arith.mulf %22, %20 : vector<4x128xf32>
    %c0_14 = arith.constant 0 : index
    %c0_15 = arith.constant 0 : index
    %24 = vector.load %arg3[%c0_14, %c0_15] : memref<1x128xf32, #tpu.memory_space<vmem>>, vector<1x128xf32>
    %25 = vector.broadcast %24 : vector<1x128xf32> to vector<4x128xf32>
    %26 = arith.addf %23, %25 : vector<4x128xf32>
    %c0_16 = arith.constant 0 : index
    %c0_17 = arith.constant 0 : index
    %27 = vector.load %arg6[%c0_16, %c0_17] : memref<4x128xf32, #tpu.memory_space<vmem>>, vector<4x128xf32>
    tpu.vector_store %arg6[%c0_16, %c0_17], %26 {strides = array<i32>} : memref<4x128xf32, #tpu.memory_space<vmem>>, vector<4x128xf32>,
    return
  }
  func.func @transform_0(%arg0: i32) -> (i32, i32) {
    %c0_i32 = arith.constant 0 : i32
    %c0_i32_0 = arith.constant 0 : i32
    return %arg0, %c0_i32 : i32, i32
  }
  func.func @transform_1(%arg0: i32) -> (i32, i32) {
    %c0_i32 = arith.constant 0 : i32
    %c0_i32_0 = arith.constant 0 : i32
    %c0_i32_1 = arith.constant 0 : i32
    return %c0_i32, %c0_i32_0 : i32, i32
  }
  func.func @transform_2(%arg0: i32) -> (i32, i32) {
    %c0_i32 = arith.constant 0 : i32
    %c0_i32_0 = arith.constant 0 : i32
    %c0_i32_1 = arith.constant 0 : i32
    return %c0_i32, %c0_i32_0 : i32, i32
  }
  func.func @transform_3(%arg0: i32) -> (i32, i32) {
    %c0_i32 = arith.constant 0 : i32
    %c0_i32_0 = arith.constant 0 : i32
    %c0_i32_1 = arith.constant 0 : i32
    return %c0_i32, %c0_i32_0 : i32, i32
  }
  func.func @transform_4(%arg0: i32) -> (i32, i32) {
    %c0_i32 = arith.constant 0 : i32
    %c0_i32_0 = arith.constant 0 : i32
    %c0_i32_1 = arith.constant 0 : i32
    return %c0_i32, %c0_i32_0 : i32, i32
  }
  func.func @transform_5(%arg0: i32) -> (i32, i32) {
    %c0_i32 = arith.constant 0 : i32
    %c0_i32_0 = arith.constant 0 : i32
    return %arg0, %c0_i32 : i32, i32
  }
}

</mosaic_0001>

<bundles_post_ra>
// kernel: tpu_custom_call.1
= control target key start
LH: loop header
LB: loop body
LE: loop exit
PB: predicated region body
PF: predicated region fallthrough
CT: control target
= control target key end

     0   :  { %v573_v3 = vmov 0.0|0.0   ;;  %vm574_vm0 = vmmov 0   ;;  %v575_v6 = vmov 0.0   ;;  %s689_s0 = inlined_call_operand.vmem [shape: f32[4,128], index: 0, kind: input, shape index: {}]   ;;  %s690_s1 = inlined_call_operand.vmem [shape: f32[1,128], index: 1, kind: input, shape index: {}]   ;;  %s691_s2 = inlined_call_operand.vmem [shape: f32[1,128], index: 2, kind: input, shape index: {}]   ;;  %s692_s3 = inlined_call_operand.vmem [shape: f32[128,4], index: 3, kind: input, shape index: {}]   ;;  %s693_s4 = inlined_call_operand.vmem [shape: f32[4,128], index: 4, kind: input, shape index: {}]   ;;  %s694_s5 = inlined_call_operand.hbm [shape: f32[4,128], index: 5, kind: output, shape index: {}]  }
   0x1   :  { %v22_v0 = vld [vmem:[%s692_s3] sm:$0xff]  ;;  %v23_v1 = vld [vmem:[%s692_s3 + $0x8] sm:$0xff]  ;;  %v24_v2 = vld [vmem:[%s692_s3 + $0x10] sm:$0xff]  ;;  %495 = vmatprep.subr.bf16.mxu0 %v573_v3  ;;  %519 = vmatprep.subr.bf16.mxu1 %v573_v3 }
   0x2   :  { %v496_v4 = vpack.c.bf16 %v23_v1, %v22_v0  ;;  %v25_v5 = vld [vmem:[%s692_s3 + $0x18] sm:$0xff]  ;;  %447 = vmatprep.mubr.msk.f32.mxu0 %vm574_vm0, %v575_v6  ;;  %482 = vmatprep.mubr.msk.f32.mxu1 %vm574_vm0, %v575_v6  ;;  %v26_v8 = vld [vmem:[%s692_s3 + $0x20] sm:$0xff]  ;;  %v27_v9 = vld [vmem:[%s692_s3 + $0x28] sm:$0xff] }
   0x3   :  { %v499_v7 = vpack.c.bf16 %v25_v5, %v24_v2 }
   0x4   :  { %497 = vmatpush3.bf16.msra.mxu0 %v496_v4  ;;  %521 = vmatpush3.bf16.msra.mxu1 %v496_v4 }
   0x5   :  { %498 = vmatprep.subr.bf16.mxu0 %v573_v3  ;;  %522 = vmatprep.subr.bf16.mxu1 %v573_v3 }
   0x6   :  { %10 = vsyncpa [#allocation3], 0  ;;  %v502_v10 = vpack.c.bf16 %v27_v9, %v26_v8  ;;  %v28_v11 = vld [vmem:[%s692_s3 + $0x30] sm:$0xff]  ;;  %v29_v12 = vld [vmem:[%s692_s3 + $0x38] sm:$0xff]  ;;  %vm186_vm1 = vcmask 1043456   ;;  %vm182_vm2 = vcmask 31744  }
   0x7   :  { %v505_v13 = vpack.c.bf16 %v29_v12, %v28_v11  ;;  %v30_v14 = vld [vmem:[%s692_s3 + $0x40] sm:$0xff]  ;;  %v31_v15 = vld [vmem:[%s692_s3 + $0x48] sm:$0xff]  ;;  %v32_v17 = vld [vmem:[%s692_s3 + $0x50] sm:$0xff]  ;;  %s576_s30 = smov [#allocation2]  }
   0x8   :  { %500 = vmatpush3.bf16.msra.mxu0 %v499_v7  ;;  %524 = vmatpush3.bf16.msra.mxu1 %v499_v7  ;;  %v508_v16 = vpack.c.bf16 %v31_v15, %v30_v14  ;;  %v33_v18 = vld [vmem:[%s692_s3 + $0x58] sm:$0xff]  ;;  %v34_v20 = vld [vmem:[%s692_s3 + $0x60] sm:$0xff]  ;;  %v35_v21 = vld [vmem:[%s692_s3 + $0x68] sm:$0xff]  ;;  %s363_s6 = sshll.u32 %s576_s30, 4  ;;  %s364_s6 = int_to_ptr.vmem [resolvable:$true] %s363_s6 }
   0x9   :  { %501 = vmatprep.subr.bf16.mxu0 %v573_v3  ;;  %525 = vmatprep.subr.bf16.mxu1 %v573_v3  ;;  %v511_v19 = vpack.c.bf16 %v33_v18, %v32_v17  ;;  %v514_v22 = vpack.c.bf16 %v35_v21, %v34_v20  ;;  %v36_v23 = vld [vmem:[%s692_s3 + $0x70] sm:$0xff]  ;;  %v37_v24 = vld [vmem:[%s692_s3 + $0x78] sm:$0xff]  ;;  %v21_v26 = vld [vmem:[%s689_s0] sm:$0xf]  ;;  %s549_s7 = scalar_lea.vmem %s364_s6, 64  ;;  %p554_p1 = scmp.lt.s32.totalorder %s364_s6, %s364_s6 }
   0xa   :  { %v517_v25 = vpack.c.bf16 %v37_v24, %v36_v23  ;;  %v110_v27 = vmul.f32 %v21_v26, %v21_v26  ;;  %v38_v28 = vld [vmem:[%s693_s4] sm:$0xf]  ;;  %p550_p0 = scmp.ne.s32.totalorder %s364_s6, %s549_s7  ;;  %p555_p2 = scmp.lt.s32.totalorder %s549_s7, %s549_s7 }
   0xb   :  { %v375_v45 = vld [vmem:[%s690_s1] ss:$0 sm:$0xff] }
   0xc   :  { %503 = vmatpush3.bf16.msra.mxu0 %v502_v10  ;;  %527 = vmatpush3.bf16.msra.mxu1 %v502_v10  ;;  %v376_v47 = vld [vmem:[%s691_s2] ss:$0 sm:$0xff]  ;;  %p556_p3 = por %p555_p2, %p554_p1 }
   0xd   :  { %504 = vmatprep.subr.bf16.mxu0 %v573_v3  ;;  %528 = vmatprep.subr.bf16.mxu1 %v573_v3 }
   0xe   :  { %p557_p4 = pnand %p556_p3, %p550_p0 }
  0x10   :  { %506 = vmatpush3.bf16.msra.mxu0 %v505_v13  ;;  %530 = vmatpush3.bf16.msra.mxu1 %v505_v13 }
  0x11   :  { %507 = vmatprep.subr.bf16.mxu0 %v573_v3  ;;  %531 = vmatprep.subr.bf16.mxu1 %v573_v3 }
  0x14   :  { %509 = vmatpush3.bf16.msra.mxu0 %v508_v16  ;;  %533 = vmatpush3.bf16.msra.mxu1 %v508_v16 }
  0x15   :  { %510 = vmatprep.subr.bf16.mxu0 %v573_v3  ;;  %534 = vmatprep.subr.bf16.mxu1 %v573_v3 }
  0x18   :  { %512 = vmatpush3.bf16.msra.mxu0 %v511_v19  ;;  %536 = vmatpush3.bf16.msra.mxu1 %v511_v19 }
  0x19   :  { %513 = vmatprep.subr.bf16.mxu0 %v573_v3  ;;  %537 = vmatprep.subr.bf16.mxu1 %v573_v3 }
  0x1c   :  { %515 = vmatpush3.bf16.msra.mxu0 %v514_v22  ;;  %539 = vmatpush3.bf16.msra.mxu1 %v514_v22 }
  0x1d   :  { %516 = vmatprep.subr.bf16.mxu0 %v573_v3  ;;  %540 = vmatprep.subr.bf16.mxu1 %v573_v3 }
  0x20   :  { %518 = vmatpush3.bf16.msra.mxu0 %v517_v25  ;;  %542 = vmatpush3.bf16.msra.mxu1 %v517_v25 }
  0x21   :  { %485 = vmatprep.subr.mxu0 %v575_v6  ;;  %490 = vmatprep.subr.mxu1 %v575_v6 }
  0x23   :  { %448 = vmatmul.mubr.f32.vlgmr.msra.gmra.mrb[0].mxu0 %v21_v26  ;;  %483 = vmatmul.mubr.f32.vlgmr.msra.gmra.mrb[0].mxu1 %v110_v27 }
  0x24   :  { %486 = vmatpush3.msk.msra.mxu0 %vm186_vm1, %v38_v28  ;;  %491 = vmatpush3.msk.msra.mxu1 %vm186_vm1, %v38_v28 }
  0x25   :  { %487 = vmatprep.mubr.msk.f32.mxu0 %vm574_vm0, %v575_v6  ;;  %492 = vmatprep.mubr.msk.f32.mxu1 %vm574_vm0, %v575_v6 }
  0xf6   :  { %v105_v29 = vpop.f32.mrb[0].mxu0  ;;  %v177_v30 = vpop.f32.mrb[0].mxu1 }
  0xf7   :  { %v109_v31 = vmul.f32 0.03125, %v105_v29  ;;  %v449_v32 = vpop.f32.mrb[1].mxu0  ;;  %v181_v33 = vmul.f32 0.03125, %v177_v30  ;;  %v484_v34 = vpop.f32.mrb[1].mxu1 }
  0xf9   :  { %488 = vmatmul.mubr.msk.f32.vlgmr.msra.gmra.mrb[2].mxu0 %vm182_vm2, %v109_v31  ;;  %493 = vmatmul.mubr.msk.f32.vlgmr.msra.gmra.mrb[2].mxu1 %vm182_vm2, %v181_v33 }
 0x1cc   :  { %v256_v35 = vpop.f32.mrb[2].mxu0  ;;  %v329_v36 = vpop.f32.mrb[2].mxu1 }
 0x1cd   :  { %v333_v37 = vmul.f32 %v256_v35, %v256_v35  ;;  %v489_v38 = vpop.f32.mrb[3].mxu0  ;;  %v494_v39 = vpop.f32.mrb[3].mxu1  ;;  %v338_v43 = vsub.f32 %v21_v26, %v256_v35 }
 0x1cf   :  { %v334_v40 = vsub.f32 %v329_v36, %v333_v37 }
 0x1d1   :  { %v335_v41 = vmax.f32 %v334_v40, 0.0 }
 0x1d3   :  { %v336_v42 = vadd.f32 1e-12, %v335_v41 }
 0x1d5   :  { %547 = vrsqrt.f32 %v336_v42 }
 0x1df   :  { %v548_v44 = vpop.eup %547 }
 0x1e0   :  { %v339_v46 = vmul.f32 %v548_v44, %v338_v43 }
 0x1e2   :  { %v347_v48 = vmul.f32 %v375_v45, %v339_v46 }
 0x1e4   :  { %v355_v49 = vadd.f32 %v376_v47, %v347_v48 }
 0x1e6   :  { %356 = vst [vmem:[#allocation2] sm:$0xf] %v355_v49 }
 0x1e7   :  { %560 = shalt.err (!%p557_p4)
}
 0x1e8   :  { %s561_s9 = scalar_lea.hbm %s694_s5, 64 }
 0x1e9   :  { %p562_p5 = scmp.ne.s32.totalorder %s694_s5, %s561_s9  ;;  %p565_p6 = scmp.lt.u32.totalorder %s561_s9, %s694_s5 }
 0x1eb   :  { %p567_p7 = pnand %p565_p6, %p562_p5 }
 0x1ed   :  { %570 = shalt.err (!%p567_p7)
}
 0x1ee   :  { %366 = dma.vmem_to_hbm [thread:$0]  %s364_s6, 64, %s694_s5, [#allocation3]  }
 0x1ef   :  { %571 = dma.done.wait [#allocation3], 64  }
 0x1f0   :  { %572 = vsyncadd [#allocation3], 4294967232 }
 0x1f1   :  { %370 = vsyncpa [#allocation3], 1 }

</bundles_post_ra>
